<compile_context>
chip_gen: v5e
topology: v5e:2x2
jax: 0.10.0
libtpu: 0.0.40
codegen_flags: <defaults>
</compile_context>

<pallas_src>
import functools

import jax
import jax.numpy as jnp
from jax.experimental import pallas as pl
from jax.experimental.pallas import tpu as pltpu

LANE = 128
SUBLANES = 8


def _silog_partial_kernel(est_ref, gt_ref, sum_ref, sum2_ref, *,
                          rows, block_rows, chunk, n_chunks, need_mask):
    """Per-block partial sums of d and d^2, folded into (8, 128) f32 tiles."""
    i = pl.program_id(0)
    block_row0 = i * block_rows

    def fold(e, g, global_row0, masked):
        # e, g: (size, LANE) f32 chunks already resident in VMEM.
        d = jnp.log(e) - jnp.log(g)
        size = e.shape[0]
        if masked:
            # Rows past the real array (only in the final, partial block) hold
            # garbage; the select also discards NaN/Inf from log(garbage).
            row_idx = jax.lax.broadcasted_iota(jnp.int32, (size, LANE), 0)
            d = jnp.where(global_row0 + row_idx < rows, d, 0.0)
        if size % SUBLANES == 0:
            # Pure vreg adds: fold the chunk into an (8, 128) partial-sum tile.
            d3 = d.reshape(size // SUBLANES, SUBLANES, LANE)
            return jnp.sum(d3, axis=0), jnp.sum(d3 * d3, axis=0)
        # Tiny-input fallback (whole array smaller than one sublane group).
        s1 = jnp.broadcast_to(jnp.sum(d, axis=0, keepdims=True), (SUBLANES, LANE))
        s2 = jnp.broadcast_to(jnp.sum(d * d, axis=0, keepdims=True), (SUBLANES, LANE))
        row0 = jax.lax.broadcasted_iota(jnp.int32, (SUBLANES, LANE), 0) == 0
        zero = jnp.zeros((SUBLANES, LANE), jnp.float32)
        return jnp.where(row0, s1, zero), jnp.where(row0, s2, zero)

    def accumulate(masked):
        if n_chunks == 1:
            s, s2 = fold(est_ref[...].astype(jnp.float32),
                         gt_ref[...].astype(jnp.float32),
                         block_row0, masked)
        else:
            def body(c, carry):
                off = pl.multiple_of(c * chunk, chunk)
                e = est_ref[pl.ds(off, chunk), :].astype(jnp.float32)
                g = gt_ref[pl.ds(off, chunk), :].astype(jnp.float32)
                ds, ds2 = fold(e, g, block_row0 + off, masked)
                return carry[0] + ds, carry[1] + ds2
            init = (jnp.zeros((SUBLANES, LANE), jnp.float32),
                    jnp.zeros((SUBLANES, LANE), jnp.float32))
            s, s2 = jax.lax.fori_loop(0, n_chunks, body, init)
        sum_ref[0] = s
        sum2_ref[0] = s2

    if need_mask:
        last = pl.num_programs(0) - 1
        pl.when(i != last)(lambda: accumulate(False))   # unmasked steady state
        pl.when(i == last)(lambda: accumulate(True))    # mask only final block
    else:
        accumulate(False)


def _run_partial_sums(e2, g2):
    """Run the Pallas kernel on a (rows, 128) view; return (sum_d, sum_d2)."""
    rows = e2.shape[0]
    is_bf16 = e2.dtype == jnp.bfloat16
    row_mult = 16 if is_bf16 else 8          # sublane packing of one vreg
    chunk_rows = 2048 if is_bf16 else 1024   # 512 KiB compute chunk per input
    target_rows = 8 * chunk_rows             # ~4 MiB DMA block per input

    if rows >= target_rows:
        block_rows, chunk = target_rows, chunk_rows
    elif rows >= 2 * chunk_rows:
        block_rows, chunk = (rows // chunk_rows) * chunk_rows, chunk_rows
    elif rows >= row_mult:
        block_rows = (rows // row_mult) * row_mult
        chunk = block_rows
    else:
        block_rows = rows                    # tiny input: block == full dim
        chunk = rows

    num_blocks = pl.cdiv(rows, block_rows)
    need_mask = (rows % block_rows) != 0
    n_chunks = block_rows // chunk

    kernel = functools.partial(
        _silog_partial_kernel, rows=rows, block_rows=block_rows,
        chunk=chunk, n_chunks=n_chunks, need_mask=need_mask)

    out_part = jax.ShapeDtypeStruct((num_blocks, SUBLANES, LANE), jnp.float32)
    part_spec = pl.BlockSpec((1, SUBLANES, LANE), lambda i: (i, 0, 0))

    sum_p, sum2_p = pl.pallas_call(
        kernel,
        out_shape=(out_part, out_part),
        grid_spec=pltpu.PrefetchScalarGridSpec(
            num_scalar_prefetch=0,
            grid=(num_blocks,),
            in_specs=[
                pl.BlockSpec((block_rows, LANE), lambda i: (i, 0)),
                pl.BlockSpec((block_rows, LANE), lambda i: (i, 0)),
            ],
            out_specs=(part_spec, part_spec),
        ),
        compiler_params=pltpu.CompilerParams(
            # No cross-step state -> safe to shard across v7x's two cores.
            dimension_semantics=("parallel",),
            # Raise v5e's 16 MiB default; a no-op on v6e/v7x (32 MiB default).
            vmem_limit_bytes=32 * 1024 * 1024,
        ),
    )(e2, g2)
    return jnp.sum(sum_p), jnp.sum(sum2_p)


def silog_loss(depth_est, depth_gt, variance_focus=0.85):
    """Forward pass of silog_loss. Inputs: any (identical) shape, e.g. NCHW."""
    depth_est = jnp.asarray(depth_est)
    depth_gt = jnp.asarray(depth_gt)
    assert depth_est.shape == depth_gt.shape
    n = depth_est.size
    assert n > 0

    def _canon(x):
        return x if x.dtype in (jnp.float32, jnp.bfloat16) else x.astype(jnp.float32)

    est, gt = _canon(depth_est), _canon(depth_gt)
    if est.dtype != gt.dtype:
        est, gt = est.astype(jnp.float32), gt.astype(jnp.float32)

    flat_e = est.reshape(-1)
    flat_g = gt.reshape(-1)
    rows = n // LANE
    n_main = rows * LANE

    sum_d = jnp.float32(0.0)
    sum_d2 = jnp.float32(0.0)

    if rows > 0:
        if n_main == n:
            main_e, main_g = flat_e, flat_g        # free reshape, zero copies
        else:
            # Rare non-lane-aligned case: XLA may materialize this prefix once,
            # but we never pad-and-copy the full arrays.
            main_e, main_g = flat_e[:n_main], flat_g[:n_main]
        s, s2 = _run_partial_sums(main_e.reshape(rows, LANE),
                                  main_g.reshape(rows, LANE))
        sum_d = sum_d + s
        sum_d2 = sum_d2 + s2

    if n_main != n:
        # <128-element tail: trivial jnp epilogue instead of padding the inputs.
        td = (jnp.log(flat_e[n_main:].astype(jnp.float32))
              - jnp.log(flat_g[n_main:].astype(jnp.float32)))
        sum_d = sum_d + jnp.sum(td)
        sum_d2 = sum_d2 + jnp.sum(td * td)

    mean_d = sum_d / n
    mean_d2 = sum_d2 / n
    # Clamp: fp rounding can make the variance expression slightly negative.
    val = jnp.maximum(mean_d2 - variance_focus * mean_d * mean_d, 0.0)
    return jnp.sqrt(val) * 10.0


def _reference(depth_est, depth_gt, variance_focus):
    d = (jnp.log(depth_est.astype(jnp.float32))
         - jnp.log(depth_gt.astype(jnp.float32)))
    return jnp.sqrt(jnp.mean(d ** 2) - variance_focus * jnp.mean(d) ** 2) * 10.0


if __name__ == "__main__":
    variance_focus = 0.85
    keys = jax.random.split(jax.random.PRNGKey(0), 10)

    def _check(name, est, gt):
        loss = silog_loss(est, gt, variance_focus)
        jax.block_until_ready(loss)
        ref = _reference(est, gt, variance_focus)
        assert jnp.allclose(loss, ref, rtol=1e-5, atol=1e-4), (name, loss, ref)

    # 1) NCHW-like, lane-aligned, single block, no masking.
    s1 = (2, 4, 16, 16)
    _check("aligned",
           jax.random.uniform(keys[0], s1, jnp.float32, minval=0.5, maxval=10.0),
           jax.random.uniform(keys[1], s1, jnp.float32, minval=0.5, maxval=10.0))

    # 2) Row count not divisible by block rows -> masked final block.
    s2 = (1, 1, 9, 3 * LANE)   # 27 rows of 128 -> blocks of 24 rows, grid=2
    _check("masked",
           jax.random.uniform(keys[2], s2, jnp.float32, minval=0.5, maxval=10.0),
           jax.random.uniform(keys[3], s2, jnp.float32, minval=0.5, maxval=10.0))

    # 3) n % 128 != 0 -> jnp tail epilogue (no full-array pad) + masked block.
    s3 = (1, 1, 10, 130)
    _check("tail",
           jax.random.uniform(keys[4], s3, jnp.float32, minval=0.5, maxval=10.0),
           jax.random.uniform(keys[5], s3, jnp.float32, minval=0.5, maxval=10.0))

    # 4) Exercises the chunked fori_loop inside one block (2048 rows, chunk=1024).
    s4 = (2, 4, 128, 256)
    _check("chunked",
           jax.random.uniform(keys[6], s4, jnp.float32, minval=0.5, maxval=10.0),
           jax.random.uniform(keys[7], s4, jnp.float32, minval=0.5, maxval=10.0))

    # 5) bf16 inputs streamed natively and cast to f32 in-kernel.
    s5 = (2, 4, 16, 16)
    _check("bf16",
           jax.random.uniform(keys[8], s5, jnp.float32, 0.5, 10.0).astype(jnp.bfloat16),
           jax.random.uniform(keys[9], s5, jnp.float32, 0.5, 10.0).astype(jnp.bfloat16))

    print("KERNEL_OK")
</pallas_src>

<mosaic_0001>
module attributes {stable_mosaic.version = 11 : i64} {
  func.func @_silog_partial_kernel(%arg0: i32, %arg1: memref<16x128xf32, #tpu.memory_space<vmem>>, %arg2: memref<16x128xf32, #tpu.memory_space<vmem>>, %arg3: memref<1x8x128xf32, #tpu.memory_space<vmem>>, %arg4: memref<1x8x128xf32, #tpu.memory_space<vmem>>) attributes {dimension_semantics = [#tpu.dimension_semantics<parallel>], iteration_bounds = array<i64: 1>, scalar_prefetch = 0 : i64, scratch_operands = 0 : i64, tpu.core_type = #tpu.core_type<tc>, window_params = [{transform_indices = @transform_0, window_bounds = array<i64: 16, 128>}, {transform_indices = @transform_1, window_bounds = array<i64: 16, 128>}, {transform_indices = @transform_2, window_bounds = array<i64: 1, 8, 128>}, {transform_indices = @transform_3, window_bounds = array<i64: 1, 8, 128>}]} {
    %c0 = arith.constant 0 : index
    %c0_0 = arith.constant 0 : index
    %0 = vector.load %arg1[%c0, %c0_0] : memref<16x128xf32, #tpu.memory_space<vmem>>, vector<16x128xf32>
    %c0_1 = arith.constant 0 : index
    %c0_2 = arith.constant 0 : index
    %1 = vector.load %arg2[%c0_1, %c0_2] : memref<16x128xf32, #tpu.memory_space<vmem>>, vector<16x128xf32>
    %2 = math.log %0 : vector<16x128xf32>
    %3 = math.log %1 : vector<16x128xf32>
    %4 = arith.subf %2, %3 : vector<16x128xf32>
    %5 = vector.shape_cast %4 : vector<16x128xf32> to vector<2x8x128xf32>
    %cst = arith.constant dense<0.000000e+00> : vector<8x128xf32>
    %6 = vector.multi_reduction <add>, %5, %cst [0] : vector<2x8x128xf32> to vector<8x128xf32>
    %7 = arith.mulf %5, %5 : vector<2x8x128xf32>
    %cst_3 = arith.constant dense<0.000000e+00> : vector<8x128xf32>
    %8 = vector.multi_reduction <add>, %7, %cst_3 [0] : vector<2x8x128xf32> to vector<8x128xf32>
    %c0_4 = arith.constant 0 : index
    %c0_5 = arith.constant 0 : index
    %c0_6 = arith.constant 0 : index
    %9 = vector.load %arg3[%c0_4, %c0_5, %c0_6] : memref<1x8x128xf32, #tpu.memory_space<vmem>>, vector<1x8x128xf32>
    %10 = vector.shape_cast %9 : vector<1x8x128xf32> to vector<8x128xf32>
    %11 = vector.shape_cast %6 : vector<8x128xf32> to vector<1x8x128xf32>
    tpu.vector_store %arg3[%c0_4, %c0_5, %c0_6], %11 {strides = array<i32>} : memref<1x8x128xf32, #tpu.memory_space<vmem>>, vector<1x8x128xf32>,
    %c0_7 = arith.constant 0 : index
    %c0_8 = arith.constant 0 : index
    %c0_9 = arith.constant 0 : index
    %12 = vector.load %arg4[%c0_7, %c0_8, %c0_9] : memref<1x8x128xf32, #tpu.memory_space<vmem>>, vector<1x8x128xf32>
    %13 = vector.shape_cast %12 : vector<1x8x128xf32> to vector<8x128xf32>
    %14 = vector.shape_cast %8 : vector<8x128xf32> to vector<1x8x128xf32>
    tpu.vector_store %arg4[%c0_7, %c0_8, %c0_9], %14 {strides = array<i32>} : memref<1x8x128xf32, #tpu.memory_space<vmem>>, vector<1x8x128xf32>,
    return
  }
  func.func @transform_0(%arg0: i32) -> (i32, i32) {
    %c0_i32 = arith.constant 0 : i32
    %c0_i32_0 = arith.constant 0 : i32
    return %arg0, %c0_i32 : i32, i32
  }
  func.func @transform_1(%arg0: i32) -> (i32, i32) {
    %c0_i32 = arith.constant 0 : i32
    %c0_i32_0 = arith.constant 0 : i32
    return %arg0, %c0_i32 : i32, i32
  }
  func.func @transform_2(%arg0: i32) -> (i32, i32, i32) {
    %c0_i32 = arith.constant 0 : i32
    %c0_i32_0 = arith.constant 0 : i32
    %c0_i32_1 = arith.constant 0 : i32
    return %arg0, %c0_i32, %c0_i32_0 : i32, i32, i32
  }
  func.func @transform_3(%arg0: i32) -> (i32, i32, i32) {
    %c0_i32 = arith.constant 0 : i32
    %c0_i32_0 = arith.constant 0 : i32
    %c0_i32_1 = arith.constant 0 : i32
    return %arg0, %c0_i32, %c0_i32_0 : i32, i32, i32
  }
}

</mosaic_0001>

<bundles_post_ra>
// kernel: tpu_custom_call.1
= control target key start
LH: loop header
LB: loop body
LE: loop exit
PB: predicated region body
PF: predicated region fallthrough
CT: control target
= control target key end

     0   :  { %9 = vsyncpa [#allocation3], 0  ;;  %s257_s0 = inlined_call_operand.hbm [shape: f32[16,128], index: 0, kind: input, shape index: {}]   ;;  %s258_s1 = inlined_call_operand.hbm [shape: f32[16,128], index: 1, kind: input, shape index: {}]   ;;  %s259_s2 = inlined_call_operand.hbm [shape: f32[1,8,128], index: 2, kind: output, shape index: {0}]   ;;  %s260_s3 = inlined_call_operand.hbm [shape: f32[1,8,128], index: 3, kind: output, shape index: {1}]  }
   0x1   :  { %10 = vsyncpa [#allocation6], 0 }
   0x2   :  { %11 = vsyncpa [#allocation4], 0 }
   0x3   :  { %12 = vsyncpa [#allocation9], 0  ;;  %s17_s14 = sshll.u32 %s257_s0, 4  ;;  %s219_s15 = smov [#allocation2]   ;;  %s18_s14 = int_to_ptr.hbm [resolvable:$true] %s17_s14 }
   0x4   :  { %s19_s16 = sshll.u32 %s219_s15, 4  ;;  %s30_s19 = sshll.u32 %s258_s1, 4  ;;  %s20_s16 = int_to_ptr.vmem [resolvable:$true] %s19_s16  ;;  %s31_s19 = int_to_ptr.hbm [resolvable:$true] %s30_s19 }
   0x5   :  { %s220_s20 = smov 128   ;;  %s221_s21 = smov 8  }
   0x6   :  { %25 = dma.hbm_to_vmem [thread:$0]  %s18_s14, 256, %s20_s16, [#allocation3], %s220_s20, %s220_s20, %s221_s21  }
   0x7   :  { %s222_s22 = smov [#allocation5]  }
   0x8   :  { %s32_s23 = sshll.u32 %s222_s22, 4  ;;  %s33_s23 = int_to_ptr.vmem [resolvable:$true] %s32_s23 }
   0x9   :  { %38 = dma.hbm_to_vmem [thread:$0]  %s31_s19, 256, %s33_s23, [#allocation6], %s220_s20, %s220_s20, %s221_s21  }
   0xa   :  { %211 = dma.done.wait [#allocation3], 256  }
   0xb   :  { %212 = vsyncadd [#allocation3], 4294967040 }
   0xc   :  { %213 = dma.done.wait [#allocation6], 256  }
   0xd   :  { %214 = vsyncadd [#allocation6], 4294967040  ;;  %v47_v0 = vld [vmem:[#allocation2] sm:$0xff]  ;;  %v48_v1 = vld [vmem:[#allocation2 + $0x8] sm:$0xff]  ;;  %s223_s0 = smov [#allocation7]   ;;  %s74_s26 = sshll.u32 %s259_s2, 4  ;;  %s75_s26 = int_to_ptr.hbm [resolvable:$true] %s74_s26 }
   0xe   :  { %v49_v2 = vld [vmem:[#allocation5] sm:$0xff]  ;;  %v50_v3 = vld [vmem:[#allocation5 + $0x8] sm:$0xff]  ;;  %107 = vlog2.f32 %v47_v0  ;;  %s72_s1 = sshll.u32 %s223_s0, 4  ;;  %s224_s27 = smov [#allocation8]   ;;  %s73_s1 = int_to_ptr.vmem [resolvable:$true] %s72_s1 }
   0xf   :  { %109 = vlog2.f32 %v48_v1  ;;  %s83_s28 = sshll.u32 %s224_s27, 4  ;;  %s85_s4 = sshll.u32 %s260_s3, 4  ;;  %s84_s28 = int_to_ptr.vmem [resolvable:$true] %s83_s28  ;;  %s86_s4 = int_to_ptr.hbm [resolvable:$true] %s85_s4 }
  0x10   :  { %111 = vlog2.f32 %v49_v2 }
  0x11   :  { %113 = vlog2.f32 %v50_v3 }
  0x14   :  { %v108_v4 = vpop.eup %107 }
  0x15   :  { %v110_v5 = vpop.eup %109  ;;  %v52_v6 = vmul.f32 0.6931472, %v108_v4 }
  0x16   :  { %v112_v7 = vpop.eup %111  ;;  %v54_v8 = vmul.f32 0.6931472, %v110_v5 }
  0x17   :  { %v114_v9 = vpop.eup %113  ;;  %v56_v10 = vmul.f32 0.6931472, %v112_v7 }
  0x18   :  { %v58_v11 = vmul.f32 0.6931472, %v114_v9 }
  0x19   :  { %v59_v12 = vsub.f32 %v52_v6, %v56_v10 }
  0x1a   :  { %v60_v13 = vsub.f32 %v54_v8, %v58_v11 }
  0x1b   :  { %v62_v14 = vmul.f32 %v59_v12, %v59_v12 }
  0x1c   :  { %v61_v15 = vadd.f32 %v60_v13, %v59_v12  ;;  %v63_v16 = vmul.f32 %v60_v13, %v60_v13 }
  0x1e   :  { %65 = vst [vmem:[#allocation7] sm:$0xff] %v61_v15  ;;  %v64_v17 = vadd.f32 %v63_v16, %v62_v14 }
  0x1f   :  { %77 = dma.vmem_to_hbm [thread:$0]  %s73_s1, 128, %s75_s26, [#allocation4]  }
  0x20   :  { %66 = vst [vmem:[#allocation8] sm:$0xff] %v64_v17 }
  0x21   :  { %88 = dma.vmem_to_hbm [thread:$0]  %s84_s28, 128, %s86_s4, [#allocation9]  }
  0x22   :  { %215 = dma.done.wait [#allocation4], 128  }
  0x23   :  { %216 = vsyncadd [#allocation4], 4294967168 }
  0x24   :  { %217 = dma.done.wait [#allocation9], 128  }
  0x25   :  { %218 = vsyncadd [#allocation9], 4294967168 }
  0x26   :  { %97 = vsyncpa [#allocation3], 1 }
  0x27   :  { %98 = vsyncpa [#allocation6], 1 }
  0x28   :  { %99 = vsyncpa [#allocation4], 1 }
  0x29   :  { %100 = vsyncpa [#allocation9], 1 }

</bundles_post_ra>
